<compile_context>
chip_gen: v5e
topology: v5e:2x2
jax: 0.10.0
libtpu: 0.0.40
codegen_flags: <defaults>
</compile_context>

<pallas_src>
import functools

import jax
import jax.numpy as jnp
from jax import lax
from jax.experimental import pallas as pl
from jax.experimental.pallas import tpu as pltpu


_UNROLL = 8  # rows gathered per fori_loop iteration (keeps loop overhead amortized)


def _round_up(x, m):
    return (x + m - 1) // m * m


def _embed_kernel(tm, ids_ref, table_ref, out_ref):
    """Gather `tm` embedding rows for this grid block.

    ids_ref   : SMEM scalar-prefetch ref, shape (N_pad,) int32
    table_ref : VMEM-resident table block, shape (V, D)
    out_ref   : VMEM output block, shape (tm, D)
    """
    base = pl.program_id(0) * tm

    def body(u, carry):
        t0 = u * _UNROLL
        for v in range(_UNROLL):
            t = t0 + v
            row = ids_ref[base + t]
            out_ref[pl.ds(t, 1), :] = table_ref[pl.ds(row, 1), :]
        return carry

    lax.fori_loop(0, tm // _UNROLL, body, 0)


def lookup_encoder(ids, table, *, tm=512):
    """Pallas equivalent of nn.Embedding(vocab_size, embedding_dim)(ids).

    ids:   int array of shape (B, S)
    table: float array of shape (V, D)
    returns array of shape (B, S, D), dtype of `table`
    """
    B, S = ids.shape
    V, D = table.shape
    N = B * S

    # Tokens per grid step: sublane-dense (multiple of 8), capped at the
    # (padded) problem size so tiny inputs don't allocate oversized blocks.
    TM = int(min(tm, _round_up(N, _UNROLL)))
    TM = _round_up(TM, _UNROLL)
    N_pad = _round_up(N, TM)

    flat_ids = ids.reshape(N).astype(jnp.int32)
    if N_pad != N:
        flat_ids = jnp.pad(flat_ids, (0, N_pad - N))  # pad with id 0 (in-bounds)

    # VMEM budget: (double-buffered) resident table + double-buffered output block.
    itemsize = jnp.dtype(table.dtype).itemsize
    needed = 2 * V * D * itemsize + 2 * TM * D * itemsize + (1 << 20)
    vmem_limit = int(min(max(needed, 32 << 20), 64 << 20))
    # TODO(synk): tables too large for VMEM residency (>~30 MiB) should fall back
    # to an HBM-resident table with a multi-in-flight make_async_copy row gather.

    out_flat = pl.pallas_call(
        functools.partial(_embed_kernel, TM),
        out_shape=jax.ShapeDtypeStruct((N_pad, D), table.dtype),
        grid_spec=pltpu.PrefetchScalarGridSpec(
            num_scalar_prefetch=1,
            grid=(N_pad // TM,),
            in_specs=[
                # Whole table resident in VMEM; constant block index -> fetched once.
                pl.BlockSpec((V, D), lambda i, ids: (0, 0)),
            ],
            out_specs=pl.BlockSpec((TM, D), lambda i, ids: (i, 0)),
        ),
        compiler_params=pltpu.CompilerParams(
            dimension_semantics=("parallel",),
            vmem_limit_bytes=vmem_limit,
        ),
    )(flat_ids, table)

    return out_flat[:N].reshape(B, S, D)


if __name__ == "__main__":
    key = jax.random.PRNGKey(0)
    k_ids, k_emb = jax.random.split(key)

    vocab_size = 64
    embedding_dim = 128  # lane-aligned
    batch, seq = 2, 8

    # nn.Embedding default init is N(0, 1)
    table = jax.random.normal(k_emb, (vocab_size, embedding_dim), dtype=jnp.float32)
    ids = jax.random.randint(k_ids, (batch, seq), 0, vocab_size, dtype=jnp.int32)

    out = lookup_encoder(ids, table)
    out = jax.block_until_ready(out)

    # Reference check: plain JAX gather (exact row copy -> exact match expected).
    ref = table[ids]
    assert out.shape == (batch, seq, embedding_dim)
    assert jnp.allclose(out, ref), "mismatch vs reference embedding lookup"

    print("KERNEL_OK")
</pallas_src>

<mosaic_0001>
module attributes {stable_mosaic.version = 11 : i64} {
  func.func @_embed_kernel(%arg0: i32, %arg1: memref<16xi32, #tpu.memory_space<smem>>, %arg2: memref<64x128xf32, #tpu.memory_space<vmem>>, %arg3: memref<16x128xf32, #tpu.memory_space<vmem>>) attributes {dimension_semantics = [#tpu.dimension_semantics<parallel>], iteration_bounds = array<i64: 1>, scalar_prefetch = 1 : i64, scratch_operands = 0 : i64, tpu.core_type = #tpu.core_type<tc>, window_params = [{pipeline_mode = #tpu.pipeline_mode<synchronous>, transform_indices = @transform_0, window_bounds = array<i64: 64, 128>}, {transform_indices = @transform_1, window_bounds = array<i64: 16, 128>}]} {
    %c16_i32 = arith.constant 16 : i32
    %0 = arith.muli %arg0, %c16_i32 : i32
    %c0_i32 = arith.constant 0 : i32
    %c2_i32 = arith.constant 2 : i32
    %1 = arith.addi %c0_i32, %c2_i32 : i32
    %c1_i32 = arith.constant 1 : i32
    scf.for %arg4 = %c0_i32 to %1 step %c1_i32  : i32 {
      %c8_i32 = arith.constant 8 : i32
      %2 = arith.muli %arg4, %c8_i32 : i32
      %c0_i32_1 = arith.constant 0 : i32
      %3 = arith.addi %2, %c0_i32_1 : i32
      %4 = arith.addi %0, %3 : i32
      %5 = arith.index_cast %4 : i32 to index
      %6 = memref.load %arg1[%5] : memref<16xi32, #tpu.memory_space<smem>>
      %7 = arith.index_cast %6 : i32 to index
      %c0 = arith.constant 0 : index
      %8 = vector.load %arg2[%7, %c0] : memref<64x128xf32, #tpu.memory_space<vmem>>, vector<1x128xf32>
      %9 = arith.index_cast %3 : i32 to index
      %c0_2 = arith.constant 0 : index
      %10 = vector.load %arg3[%9, %c0_2] : memref<16x128xf32, #tpu.memory_space<vmem>>, vector<1x128xf32>
      tpu.vector_store %arg3[%9, %c0_2], %8 {strides = array<i32>} : memref<16x128xf32, #tpu.memory_space<vmem>>, vector<1x128xf32>,
      %c1_i32_3 = arith.constant 1 : i32
      %11 = arith.addi %2, %c1_i32_3 : i32
      %12 = arith.addi %0, %11 : i32
      %13 = arith.index_cast %12 : i32 to index
      %14 = memref.load %arg1[%13] : memref<16xi32, #tpu.memory_space<smem>>
      %15 = arith.index_cast %14 : i32 to index
      %c0_4 = arith.constant 0 : index
      %16 = vector.load %arg2[%15, %c0_4] : memref<64x128xf32, #tpu.memory_space<vmem>>, vector<1x128xf32>
      %17 = arith.index_cast %11 : i32 to index
      %c0_5 = arith.constant 0 : index
      %18 = vector.load %arg3[%17, %c0_5] : memref<16x128xf32, #tpu.memory_space<vmem>>, vector<1x128xf32>
      tpu.vector_store %arg3[%17, %c0_5], %16 {strides = array<i32>} : memref<16x128xf32, #tpu.memory_space<vmem>>, vector<1x128xf32>,
      %c2_i32_6 = arith.constant 2 : i32
      %19 = arith.addi %2, %c2_i32_6 : i32
      %20 = arith.addi %0, %19 : i32
      %21 = arith.index_cast %20 : i32 to index
      %22 = memref.load %arg1[%21] : memref<16xi32, #tpu.memory_space<smem>>
      %23 = arith.index_cast %22 : i32 to index
      %c0_7 = arith.constant 0 : index
      %24 = vector.load %arg2[%23, %c0_7] : memref<64x128xf32, #tpu.memory_space<vmem>>, vector<1x128xf32>
      %25 = arith.index_cast %19 : i32 to index
      %c0_8 = arith.constant 0 : index
      %26 = vector.load %arg3[%25, %c0_8] : memref<16x128xf32, #tpu.memory_space<vmem>>, vector<1x128xf32>
      tpu.vector_store %arg3[%25, %c0_8], %24 {strides = array<i32>} : memref<16x128xf32, #tpu.memory_space<vmem>>, vector<1x128xf32>,
      %c3_i32 = arith.constant 3 : i32
      %27 = arith.addi %2, %c3_i32 : i32
      %28 = arith.addi %0, %27 : i32
      %29 = arith.index_cast %28 : i32 to index
      %30 = memref.load %arg1[%29] : memref<16xi32, #tpu.memory_space<smem>>
      %31 = arith.index_cast %30 : i32 to index
      %c0_9 = arith.constant 0 : index
      %32 = vector.load %arg2[%31, %c0_9] : memref<64x128xf32, #tpu.memory_space<vmem>>, vector<1x128xf32>
      %33 = arith.index_cast %27 : i32 to index
      %c0_10 = arith.constant 0 : index
      %34 = vector.load %arg3[%33, %c0_10] : memref<16x128xf32, #tpu.memory_space<vmem>>, vector<1x128xf32>
      tpu.vector_store %arg3[%33, %c0_10], %32 {strides = array<i32>} : memref<16x128xf32, #tpu.memory_space<vmem>>, vector<1x128xf32>,
      %c4_i32 = arith.constant 4 : i32
      %35 = arith.addi %2, %c4_i32 : i32
      %36 = arith.addi %0, %35 : i32
      %37 = arith.index_cast %36 : i32 to index
      %38 = memref.load %arg1[%37] : memref<16xi32, #tpu.memory_space<smem>>
      %39 = arith.index_cast %38 : i32 to index
      %c0_11 = arith.constant 0 : index
      %40 = vector.load %arg2[%39, %c0_11] : memref<64x128xf32, #tpu.memory_space<vmem>>, vector<1x128xf32>
      %41 = arith.index_cast %35 : i32 to index
      %c0_12 = arith.constant 0 : index
      %42 = vector.load %arg3[%41, %c0_12] : memref<16x128xf32, #tpu.memory_space<vmem>>, vector<1x128xf32>
      tpu.vector_store %arg3[%41, %c0_12], %40 {strides = array<i32>} : memref<16x128xf32, #tpu.memory_space<vmem>>, vector<1x128xf32>,
      %c5_i32 = arith.constant 5 : i32
      %43 = arith.addi %2, %c5_i32 : i32
      %44 = arith.addi %0, %43 : i32
      %45 = arith.index_cast %44 : i32 to index
      %46 = memref.load %arg1[%45] : memref<16xi32, #tpu.memory_space<smem>>
      %47 = arith.index_cast %46 : i32 to index
      %c0_13 = arith.constant 0 : index
      %48 = vector.load %arg2[%47, %c0_13] : memref<64x128xf32, #tpu.memory_space<vmem>>, vector<1x128xf32>
      %49 = arith.index_cast %43 : i32 to index
      %c0_14 = arith.constant 0 : index
      %50 = vector.load %arg3[%49, %c0_14] : memref<16x128xf32, #tpu.memory_space<vmem>>, vector<1x128xf32>
      tpu.vector_store %arg3[%49, %c0_14], %48 {strides = array<i32>} : memref<16x128xf32, #tpu.memory_space<vmem>>, vector<1x128xf32>,
      %c6_i32 = arith.constant 6 : i32
      %51 = arith.addi %2, %c6_i32 : i32
      %52 = arith.addi %0, %51 : i32
      %53 = arith.index_cast %52 : i32 to index
      %54 = memref.load %arg1[%53] : memref<16xi32, #tpu.memory_space<smem>>
      %55 = arith.index_cast %54 : i32 to index
      %c0_15 = arith.constant 0 : index
      %56 = vector.load %arg2[%55, %c0_15] : memref<64x128xf32, #tpu.memory_space<vmem>>, vector<1x128xf32>
      %57 = arith.index_cast %51 : i32 to index
      %c0_16 = arith.constant 0 : index
      %58 = vector.load %arg3[%57, %c0_16] : memref<16x128xf32, #tpu.memory_space<vmem>>, vector<1x128xf32>
      tpu.vector_store %arg3[%57, %c0_16], %56 {strides = array<i32>} : memref<16x128xf32, #tpu.memory_space<vmem>>, vector<1x128xf32>,
      %c7_i32 = arith.constant 7 : i32
      %59 = arith.addi %2, %c7_i32 : i32
      %60 = arith.addi %0, %59 : i32
      %61 = arith.index_cast %60 : i32 to index
      %62 = memref.load %arg1[%61] : memref<16xi32, #tpu.memory_space<smem>>
      %63 = arith.index_cast %62 : i32 to index
      %c0_17 = arith.constant 0 : index
      %64 = vector.load %arg2[%63, %c0_17] : memref<64x128xf32, #tpu.memory_space<vmem>>, vector<1x128xf32>
      %65 = arith.index_cast %59 : i32 to index
      %c0_18 = arith.constant 0 : index
      %66 = vector.load %arg3[%65, %c0_18] : memref<16x128xf32, #tpu.memory_space<vmem>>, vector<1x128xf32>
      tpu.vector_store %arg3[%65, %c0_18], %64 {strides = array<i32>} : memref<16x128xf32, #tpu.memory_space<vmem>>, vector<1x128xf32>,
    }
    %c2_i32_0 = arith.constant 2 : i32
    return
  }
  func.func @transform_0(%arg0: i32, %arg1: memref<16xi32, #tpu.memory_space<smem>>) -> (i32, i32) {
    %c0_i32 = arith.constant 0 : i32
    %c0_i32_0 = arith.constant 0 : i32
    %c0_i32_1 = arith.constant 0 : i32
    return %c0_i32, %c0_i32_0 : i32, i32
  }
  func.func @transform_1(%arg0: i32, %arg1: memref<16xi32, #tpu.memory_space<smem>>) -> (i32, i32) {
    %c0_i32 = arith.constant 0 : i32
    %c0_i32_0 = arith.constant 0 : i32
    return %arg0, %c0_i32 : i32, i32
  }
}

</mosaic_0001>

<bundles_post_ra>
// kernel: tpu_custom_call.1
= control target key start
LH: loop header
LB: loop body
LE: loop exit
PB: predicated region body
PF: predicated region fallthrough
CT: control target
= control target key end

     0   :  { %s254_s12 = smov [#allocation3]   ;;  %s298_s0 = inlined_call_operand.hbm [shape: s32[16], index: 0, kind: input, shape index: {}]   ;;  %s299_s1 = inlined_call_operand.hbm [shape: f32[64,128], index: 1, kind: input, shape index: {}]   ;;  %s300_s2 = inlined_call_operand.hbm [shape: f32[16,128], index: 2, kind: output, shape index: {}]  }
   0x1   :  { %s8_s11 = sshll.u32 %s298_s0, 4  ;;  %s9_s11 = int_to_ptr.hbm [resolvable:$true] %s8_s11 }
   0x2   :  { %11 = dma.hbm_to_smem %s9_s11, 16, %s254_s12, [#allocation2] }
   0x3   :  { %244 = dma.done.wait [#allocation2], 16 }
   0x4   :  { %245 = vsyncadd [#allocation2], 4294967280 }
   0x5   :  { %14 = sfence }
   0x6   :  { %15 = vsyncpa [#allocation5], 0 }
   0x7   :  { %16 = vsyncpa [#allocation6], 0  ;;  %s21_s15 = sshll.u32 %s299_s1, 4  ;;  %s255_s16 = smov [#allocation4]   ;;  %s22_s15 = int_to_ptr.hbm [resolvable:$true] %s21_s15 }
   0x8   :  { %s23_s17 = sshll.u32 %s255_s16, 4  ;;  %s256_s18 = smov 128   ;;  %s24_s17 = int_to_ptr.vmem [resolvable:$true] %s23_s17 }
   0x9   :  { %s257_s19 = smov 8  }
   0xa   :  { %29 = dma.hbm_to_vmem [thread:$0]  %s22_s15, 1024, %s24_s17, [#allocation5], %s256_s18, %s256_s18, %s257_s19  }
   0xb   :  { %246 = dma.done.wait [#allocation5], 1024  }
   0xc   :  { %247 = vsyncadd [#allocation5], 4294966272  ;;  %s283_s0 = smov 0  }
   0xd LB: > { %s152_s1 = sshll.u32 %s252_s0, 3  ;;  %s40_s0 = sadd.s32 1, %s252_s0   ;;  %s252_s0 = sphi %s283_s0, %s40_s0  }
   0xe   : > { %s43_s20 = sld [smem:[#allocation3 + %s152_s1]]  ;;  %s48_s21 = sadd.s32 1, %s152_s1 }
   0xf   : > { %s55_s22 = sadd.s32 2, %s152_s1  ;;  %s50_s23 = sld [smem:[#allocation3 + %s48_s21]] }
  0x10   : > { %s62_s24 = sadd.s32 3, %s152_s1  ;;  %s57_s25 = sld [smem:[#allocation3 + %s55_s22]] }
  0x11   : > { %s69_s26 = sadd.s32 4, %s152_s1  ;;  %s64_s27 = sld [smem:[#allocation3 + %s62_s24]] }
  0x12   : > { %s76_s28 = sadd.s32 5, %s152_s1  ;;  %s71_s29 = sld [smem:[#allocation3 + %s69_s26]] }
  0x13   : > { %s83_s30 = sadd.s32 6, %s152_s1  ;;  %s78_s3 = sld [smem:[#allocation3 + %s76_s28]] }
  0x14   : > { %s44_s4 = scalar_lea.vmem [#allocation4], %s43_s20  ;;  %s85_s5 = sld [smem:[#allocation3 + %s83_s30]] }
  0x15   : > { %v45_v0 = vld [vmem:[%s44_s4] sm:$0x1]  ;;  %s90_s6 = sadd.s32 7, %s152_s1  ;;  %s46_s7 = scalar_lea.vmem [#allocation7], %s152_s1 }
  0x16   : > { %47 = vst [vmem:[%s46_s7] sm:$0x1] %v45_v0  ;;  %s92_s8 = sld [smem:[#allocation3 + %s90_s6]]  ;;  %s51_s9 = scalar_lea.vmem [#allocation4], %s50_s23 }
  0x17   : > { %v52_v1 = vld [vmem:[%s51_s9] sm:$0x1]  ;;  %s58_s10 = scalar_lea.vmem [#allocation4], %s57_s25  ;;  %s65_s11 = scalar_lea.vmem [#allocation4], %s64_s27 }
  0x18   : > { %154 = vst [vmem:[%s46_s7 + $0x1] sm:$0x1] %v52_v1  ;;  %v59_v2 = vld [vmem:[%s58_s10] sm:$0x1]  ;;  %s72_s12 = scalar_lea.vmem [#allocation4], %s71_s29  ;;  %p37_p0 = scmp.ge.s32.totalorder %s40_s0, 2  }
  0x19   : > { %156 = vst [vmem:[%s46_s7 + $0x2] sm:$0x1] %v59_v2  ;;  %v66_v3 = vld [vmem:[%s65_s11] sm:$0x1]  ;;  %s79_s13 = scalar_lea.vmem [#allocation4], %s78_s3  ;;  %s103_s1 = sshll.u32 (%p37_p0), %s300_s2, 4  ;;  %s104_s1 = int_to_ptr.hbm [resolvable:$true] %s103_s1 }
  0x1a   : > { %158 = vst [vmem:[%s46_s7 + $0x3] sm:$0x1] %v66_v3  ;;  %v73_v4 = vld [vmem:[%s72_s12] sm:$0x1]  ;;  %s86_s14 = scalar_lea.vmem [#allocation4], %s85_s5  ;;  %39 = sbr.rel (!%p37_p0) target bundleno = 13 (0xd), region = 51 }
  0x1b   : > { %160 = vst [vmem:[%s46_s7 + $0x4] sm:$0x1] %v73_v4  ;;  %v80_v5 = vld [vmem:[%s79_s13] sm:$0x1]  ;;  %s258_s20 = smov (%p37_p0), [#allocation7]  }
  0x1c   : > { %162 = vst [vmem:[%s46_s7 + $0x5] sm:$0x1] %v80_v5  ;;  %v87_v6 = vld [vmem:[%s86_s14] sm:$0x1]  ;;  %s93_s15 = scalar_lea.vmem [#allocation4], %s92_s8  ;;  %s101_s21 = sshll.u32 (%p37_p0), %s258_s20, 4  ;;  %s102_s21 = int_to_ptr.vmem [resolvable:$true] %s101_s21 }
  0x1d   : > { %164 = vst [vmem:[%s46_s7 + $0x6] sm:$0x1] %v87_v6  ;;  %v94_v7 = vld [vmem:[%s93_s15] sm:$0x1] }
  0x1e   : > { %166 = vst [vmem:[%s46_s7 + $0x7] sm:$0x1] %v94_v7 }
  0x1f   :  { %109 = dma.vmem_to_hbm [thread:$0]  %s102_s21, 256, %s104_s1, [#allocation6], %s256_s18, %s256_s18, %s257_s19  }
  0x20   :  { %248 = dma.done.wait [#allocation6], 256  }
  0x21   :  { %249 = vsyncadd [#allocation6], 4294967040 }
  0x22   :  { %114 = vsyncpa [#allocation5], 1 }
  0x23   :  { %115 = vsyncpa [#allocation6], 1 }

</bundles_post_ra>
